<compile_context>
chip_gen: v5e
topology: v5e:2x2
jax: 0.10.0
libtpu: 0.0.40
codegen_flags: <defaults>
</compile_context>

<pallas_src>
import functools
import math

import jax
import jax.numpy as jnp
import numpy as np
from jax.experimental import pallas as pl
from jax.experimental.pallas import tpu as pltpu


def _round_up(x, m):
    return ((x + m - 1) // m) * m


def _egat_kernel(h_ref, mask_ref, w_ref, a_ref, o_ref, *, num_nodes, node_dim,
                 matmul_dtype=None):
    # h_ref:    (TB, N*D)   flattened node features for TB batch rows
    # mask_ref: (TB, N)     float32, > 0 where the node is masked out
    # w_ref:    (D, HP)     projection weight (hidden padded to 128-multiple)
    # a_ref:    (2, HP)     row 0 -> a1 (node-0 half), row 1 -> a2 (node-i half)
    # o_ref:    (TB, HP)    lane-dense output block
    W = w_ref[...]                                   # (D, HP)
    a1 = a_ref[0:1, :]                               # (1, HP)
    a2 = a_ref[1:2, :]                               # (1, HP)
    hflat = h_ref[...]                               # (TB, N*D)

    if matmul_dtype is not None:
        W = W.astype(matmul_dtype)

    def proj(n):
        # Per-node projection: (TB, D) @ (D, HP) on the MXU with M = TB.
        hn = hflat[:, n * node_dim:(n + 1) * node_dim]          # (TB, D)
        if matmul_dtype is not None:
            hn = hn.astype(matmul_dtype)
        return jnp.dot(hn, W, preferred_element_type=jnp.float32)  # (TB, HP)

    # ---- pass 1: attention logits, lane-dense (TB, N) -----------------------
    H0 = proj(0)                                                # reused at the end
    e0 = jnp.sum(H0 * a1, axis=-1, keepdims=True)               # (TB, 1)
    e_cols = [jnp.sum(H0 * a2, axis=-1, keepdims=True)]         # (TB, 1)
    for n in range(1, num_nodes):
        e_cols.append(jnp.sum(proj(n) * a2, axis=-1, keepdims=True))
    e = jnp.concatenate(e_cols, axis=-1) + e0                   # (TB, N)

    e = jnp.where(e > 0, e, 0.2 * e)                            # LeakyReLU(0.2)
    e = jnp.where(mask_ref[...] > 0.0, -jnp.inf, e)             # mask -> -inf

    # ---- masked softmax over the node (lane) axis ----------------------------
    e_max = jnp.max(e, axis=-1, keepdims=True)                  # (TB, 1)
    p = jnp.exp(e - e_max)                                      # (TB, N); exp(-inf)=0
    denom = jnp.sum(p, axis=-1, keepdims=True)                  # (TB, 1)
    attn = p * pl.reciprocal(denom)                             # (TB, N)

    # ---- pass 2: attention-weighted sum (recompute H_n; MXU is otherwise idle)
    ws = attn[:, 0:1] * H0
    for n in range(1, num_nodes):
        ws = ws + attn[:, n:n + 1] * proj(n)                    # (TB, HP)

    x = H0 + ws                                                 # add_self=True
    out = jnp.where(x > 0, x, jnp.exp(x) - 1.0)                 # ELU, add_elu=True
    o_ref[...] = out.astype(o_ref.dtype)


def e_gat_forward(h, W, a, mask=None, *, block_b=None, matmul_dtype=None):
    """h: (B, N, D); W: (D, hid); a: (2*hid, 1); mask: (B, N) bool or None."""
    B, N, D = h.shape
    hid = W.shape[1]
    HP = _round_up(hid, 128)        # lane-dense hidden width
    ND = N * D

    # Batch tile: amortize per-step overhead, keep the grid >= 2 for megacore
    # when B is large.  Padded batch rows are all-zero / unmasked (no NaNs).
    if block_b is None:
        block_b = 128
    TB = min(_round_up(B, 8), _round_up(block_b, 8))
    Bp = _round_up(B, TB)

    h2 = h.astype(jnp.float32).reshape(B, ND)
    if Bp != B:
        h2 = jnp.pad(h2, ((0, Bp - B), (0, 0)))
    if mask is None:
        mask_f = jnp.zeros((Bp, N), jnp.float32)
    else:
        mask_f = mask.astype(jnp.float32).reshape(B, N)
        if Bp != B:
            mask_f = jnp.pad(mask_f, ((0, Bp - B), (0, 0)))

    Wp = jnp.zeros((D, HP), jnp.float32).at[:, :hid].set(W.astype(jnp.float32))
    ap = jnp.zeros((2, HP), jnp.float32)
    ap = ap.at[0, :hid].set(a[:hid, 0].astype(jnp.float32))
    ap = ap.at[1, :hid].set(a[hid:, 0].astype(jnp.float32))

    kernel = functools.partial(_egat_kernel, num_nodes=N, node_dim=D,
                               matmul_dtype=matmul_dtype)

    out = pl.pallas_call(
        kernel,
        out_shape=jax.ShapeDtypeStruct((Bp, HP), jnp.float32),
        grid_spec=pltpu.PrefetchScalarGridSpec(
            num_scalar_prefetch=0,
            grid=(Bp // TB,),
            in_specs=[
                pl.BlockSpec((TB, ND), lambda i: (i, 0)),
                pl.BlockSpec((TB, N), lambda i: (i, 0)),
                pl.BlockSpec((D, HP), lambda i: (0, 0)),
                pl.BlockSpec((2, HP), lambda i: (0, 0)),
            ],
            out_specs=pl.BlockSpec((TB, HP), lambda i: (i, 0)),
        ),
        compiler_params=pltpu.CompilerParams(
            dimension_semantics=("parallel",)),
    )(h2, mask_f, Wp, ap)

    return out[:B, :hid]


def e_gat_reference(h, W, a, mask=None):
    """Pure-JAX reference matching the PyTorch forward."""
    H = jnp.matmul(h, W)                                        # (B, N, hid)
    B, N, C = H.shape
    a_input = jnp.concatenate(
        [jnp.repeat(H[:, 0:1, :], N, axis=1), H], axis=2)       # (B, N, 2*hid)
    e = jnp.matmul(a_input, a)[..., 0]                          # (B, N)
    e = jnp.where(e > 0, e, 0.2 * e)                            # LeakyReLU
    if mask is not None:
        e = jnp.where(mask, -jnp.inf, e)
    attention = jax.nn.softmax(e, axis=-1)
    if mask is not None:
        attention = jnp.where(mask, 0.0, attention)
    weighted_sum = jnp.matmul(attention[:, None, :], H)[:, 0, :]  # (B, hid)
    out = jax.nn.elu(H[:, 0, :] + weighted_sum)
    return out


def xavier_uniform(key, shape, gain=1.414):
    fan_in, fan_out = shape[0], shape[1]
    bound = gain * math.sqrt(6.0 / (fan_in + fan_out))
    return jax.random.uniform(key, shape, jnp.float32, minval=-bound, maxval=bound)


if __name__ == "__main__":
    B, N, input_dim, hidden_dim = 2, 8, 16, 32

    key = jax.random.PRNGKey(0)
    k_h, k_w, k_a, k_m, k_h2, k_m2 = jax.random.split(key, 6)

    h = jax.random.normal(k_h, (B, N, input_dim), jnp.float32)
    W = xavier_uniform(k_w, (input_dim, hidden_dim))
    a = xavier_uniform(k_a, (2 * hidden_dim, 1))

    # mask a few nodes per batch (never node 0, so no fully-masked row)
    mask = jax.random.bernoulli(k_m, 0.3, (B, N))
    mask = mask.at[:, 0].set(False)

    out = jax.block_until_ready(e_gat_forward(h, W, a, mask))
    ref = e_gat_reference(h, W, a, mask)
    np.testing.assert_allclose(np.asarray(out), np.asarray(ref),
                               rtol=1e-5, atol=1e-5)

    # mask=None path
    out_nm = jax.block_until_ready(e_gat_forward(h, W, a, None))
    ref_nm = e_gat_reference(h, W, a, None)
    np.testing.assert_allclose(np.asarray(out_nm), np.asarray(ref_nm),
                               rtol=1e-5, atol=1e-5)

    # larger batch: exercises multi-step grid + batch padding
    B2 = 300
    h2 = jax.random.normal(k_h2, (B2, N, input_dim), jnp.float32)
    mask2 = jax.random.bernoulli(k_m2, 0.3, (B2, N)).at[:, 0].set(False)
    out2 = jax.block_until_ready(e_gat_forward(h2, W, a, mask2))
    ref2 = e_gat_reference(h2, W, a, mask2)
    np.testing.assert_allclose(np.asarray(out2), np.asarray(ref2),
                               rtol=1e-5, atol=1e-5)

    print("KERNEL_OK")
</pallas_src>

<mosaic_0001>
module attributes {stable_mosaic.version = 11 : i64} {
  func.func @_egat_kernel(%arg0: i32, %arg1: memref<8x128xf32, #tpu.memory_space<vmem>>, %arg2: memref<8x8xf32, #tpu.memory_space<vmem>>, %arg3: memref<16x128xf32, #tpu.memory_space<vmem>>, %arg4: memref<2x128xf32, #tpu.memory_space<vmem>>, %arg5: memref<8x128xf32, #tpu.memory_space<vmem>>) attributes {dimension_semantics = [#tpu.dimension_semantics<parallel>], iteration_bounds = array<i64: 1>, scalar_prefetch = 0 : i64, scratch_operands = 0 : i64, tpu.core_type = #tpu.core_type<tc>, window_params = [{transform_indices = @transform_0, window_bounds = array<i64: 8, 128>}, {transform_indices = @transform_1, window_bounds = array<i64: 8, 8>}, {pipeline_mode = #tpu.pipeline_mode<synchronous>, transform_indices = @transform_2, window_bounds = array<i64: 16, 128>}, {pipeline_mode = #tpu.pipeline_mode<synchronous>, transform_indices = @transform_3, window_bounds = array<i64: 2, 128>}, {transform_indices = @transform_4, window_bounds = array<i64: 8, 128>}]} {
    %c0 = arith.constant 0 : index
    %c0_0 = arith.constant 0 : index
    %0 = vector.load %arg3[%c0, %c0_0] : memref<16x128xf32, #tpu.memory_space<vmem>>, vector<16x128xf32>
    %c0_1 = arith.constant 0 : index
    %c0_2 = arith.constant 0 : index
    %1 = vector.load %arg4[%c0_1, %c0_2] : memref<2x128xf32, #tpu.memory_space<vmem>>, vector<1x128xf32>
    %c1 = arith.constant 1 : index
    %c0_3 = arith.constant 0 : index
    %2 = vector.load %arg4[%c1, %c0_3] : memref<2x128xf32, #tpu.memory_space<vmem>>, vector<1x128xf32>
    %c0_4 = arith.constant 0 : index
    %c0_5 = arith.constant 0 : index
    %3 = vector.load %arg1[%c0_4, %c0_5] : memref<8x128xf32, #tpu.memory_space<vmem>>, vector<8x128xf32>
    %4 = vector.extract_strided_slice %3 {offsets = [0, 0], sizes = [8, 16], strides = [1, 1]} : vector<8x128xf32> to vector<8x16xf32>
    %cst = arith.constant dense<0.000000e+00> : vector<8x128xf32>
    %5 = tpu.matmul %4, %0, %cst {dimension_numbers = #tpu.dot_dimension_numbers<[1], [0], [0], [1], [0, 0, 1, 1], [], []>} : vector<8x16xf32>, vector<16x128xf32>, vector<8x128xf32> -> vector<8x128xf32>
    %6 = vector.broadcast %1 : vector<1x128xf32> to vector<8x128xf32>
    %7 = arith.mulf %5, %6 : vector<8x128xf32>
    %cst_6 = arith.constant dense<0.000000e+00> : vector<8xf32>
    %8 = vector.multi_reduction <add>, %7, %cst_6 [1] : vector<8x128xf32> to vector<8xf32>
    %9 = vector.shape_cast %8 : vector<8xf32> to vector<8x1xf32>
    %10 = vector.broadcast %2 : vector<1x128xf32> to vector<8x128xf32>
    %11 = arith.mulf %5, %10 : vector<8x128xf32>
    %cst_7 = arith.constant dense<0.000000e+00> : vector<8xf32>
    %12 = vector.multi_reduction <add>, %11, %cst_7 [1] : vector<8x128xf32> to vector<8xf32>
    %13 = vector.shape_cast %12 : vector<8xf32> to vector<8x1xf32>
    %14 = vector.extract_strided_slice %3 {offsets = [0, 16], sizes = [8, 16], strides = [1, 1]} : vector<8x128xf32> to vector<8x16xf32>
    %cst_8 = arith.constant dense<0.000000e+00> : vector<8x128xf32>
    %15 = tpu.matmul %14, %0, %cst_8 {dimension_numbers = #tpu.dot_dimension_numbers<[1], [0], [0], [1], [0, 0, 1, 1], [], []>} : vector<8x16xf32>, vector<16x128xf32>, vector<8x128xf32> -> vector<8x128xf32>
    %16 = vector.broadcast %2 : vector<1x128xf32> to vector<8x128xf32>
    %17 = arith.mulf %15, %16 : vector<8x128xf32>
    %cst_9 = arith.constant dense<0.000000e+00> : vector<8xf32>
    %18 = vector.multi_reduction <add>, %17, %cst_9 [1] : vector<8x128xf32> to vector<8xf32>
    %19 = vector.shape_cast %18 : vector<8xf32> to vector<8x1xf32>
    %20 = vector.extract_strided_slice %3 {offsets = [0, 32], sizes = [8, 16], strides = [1, 1]} : vector<8x128xf32> to vector<8x16xf32>
    %cst_10 = arith.constant dense<0.000000e+00> : vector<8x128xf32>
    %21 = tpu.matmul %20, %0, %cst_10 {dimension_numbers = #tpu.dot_dimension_numbers<[1], [0], [0], [1], [0, 0, 1, 1], [], []>} : vector<8x16xf32>, vector<16x128xf32>, vector<8x128xf32> -> vector<8x128xf32>
    %22 = vector.broadcast %2 : vector<1x128xf32> to vector<8x128xf32>
    %23 = arith.mulf %21, %22 : vector<8x128xf32>
    %cst_11 = arith.constant dense<0.000000e+00> : vector<8xf32>
    %24 = vector.multi_reduction <add>, %23, %cst_11 [1] : vector<8x128xf32> to vector<8xf32>
    %25 = vector.shape_cast %24 : vector<8xf32> to vector<8x1xf32>
    %26 = vector.extract_strided_slice %3 {offsets = [0, 48], sizes = [8, 16], strides = [1, 1]} : vector<8x128xf32> to vector<8x16xf32>
    %cst_12 = arith.constant dense<0.000000e+00> : vector<8x128xf32>
    %27 = tpu.matmul %26, %0, %cst_12 {dimension_numbers = #tpu.dot_dimension_numbers<[1], [0], [0], [1], [0, 0, 1, 1], [], []>} : vector<8x16xf32>, vector<16x128xf32>, vector<8x128xf32> -> vector<8x128xf32>
    %28 = vector.broadcast %2 : vector<1x128xf32> to vector<8x128xf32>
    %29 = arith.mulf %27, %28 : vector<8x128xf32>
    %cst_13 = arith.constant dense<0.000000e+00> : vector<8xf32>
    %30 = vector.multi_reduction <add>, %29, %cst_13 [1] : vector<8x128xf32> to vector<8xf32>
    %31 = vector.shape_cast %30 : vector<8xf32> to vector<8x1xf32>
    %32 = vector.extract_strided_slice %3 {offsets = [0, 64], sizes = [8, 16], strides = [1, 1]} : vector<8x128xf32> to vector<8x16xf32>
    %cst_14 = arith.constant dense<0.000000e+00> : vector<8x128xf32>
    %33 = tpu.matmul %32, %0, %cst_14 {dimension_numbers = #tpu.dot_dimension_numbers<[1], [0], [0], [1], [0, 0, 1, 1], [], []>} : vector<8x16xf32>, vector<16x128xf32>, vector<8x128xf32> -> vector<8x128xf32>
    %34 = vector.broadcast %2 : vector<1x128xf32> to vector<8x128xf32>
    %35 = arith.mulf %33, %34 : vector<8x128xf32>
    %cst_15 = arith.constant dense<0.000000e+00> : vector<8xf32>
    %36 = vector.multi_reduction <add>, %35, %cst_15 [1] : vector<8x128xf32> to vector<8xf32>
    %37 = vector.shape_cast %36 : vector<8xf32> to vector<8x1xf32>
    %38 = vector.extract_strided_slice %3 {offsets = [0, 80], sizes = [8, 16], strides = [1, 1]} : vector<8x128xf32> to vector<8x16xf32>
    %cst_16 = arith.constant dense<0.000000e+00> : vector<8x128xf32>
    %39 = tpu.matmul %38, %0, %cst_16 {dimension_numbers = #tpu.dot_dimension_numbers<[1], [0], [0], [1], [0, 0, 1, 1], [], []>} : vector<8x16xf32>, vector<16x128xf32>, vector<8x128xf32> -> vector<8x128xf32>
    %40 = vector.broadcast %2 : vector<1x128xf32> to vector<8x128xf32>
    %41 = arith.mulf %39, %40 : vector<8x128xf32>
    %cst_17 = arith.constant dense<0.000000e+00> : vector<8xf32>
    %42 = vector.multi_reduction <add>, %41, %cst_17 [1] : vector<8x128xf32> to vector<8xf32>
    %43 = vector.shape_cast %42 : vector<8xf32> to vector<8x1xf32>
    %44 = vector.extract_strided_slice %3 {offsets = [0, 96], sizes = [8, 16], strides = [1, 1]} : vector<8x128xf32> to vector<8x16xf32>
    %cst_18 = arith.constant dense<0.000000e+00> : vector<8x128xf32>
    %45 = tpu.matmul %44, %0, %cst_18 {dimension_numbers = #tpu.dot_dimension_numbers<[1], [0], [0], [1], [0, 0, 1, 1], [], []>} : vector<8x16xf32>, vector<16x128xf32>, vector<8x128xf32> -> vector<8x128xf32>
    %46 = vector.broadcast %2 : vector<1x128xf32> to vector<8x128xf32>
    %47 = arith.mulf %45, %46 : vector<8x128xf32>
    %cst_19 = arith.constant dense<0.000000e+00> : vector<8xf32>
    %48 = vector.multi_reduction <add>, %47, %cst_19 [1] : vector<8x128xf32> to vector<8xf32>
    %49 = vector.shape_cast %48 : vector<8xf32> to vector<8x1xf32>
    %50 = vector.extract_strided_slice %3 {offsets = [0, 112], sizes = [8, 16], strides = [1, 1]} : vector<8x128xf32> to vector<8x16xf32>
    %cst_20 = arith.constant dense<0.000000e+00> : vector<8x128xf32>
    %51 = tpu.matmul %50, %0, %cst_20 {dimension_numbers = #tpu.dot_dimension_numbers<[1], [0], [0], [1], [0, 0, 1, 1], [], []>} : vector<8x16xf32>, vector<16x128xf32>, vector<8x128xf32> -> vector<8x128xf32>
    %52 = vector.broadcast %2 : vector<1x128xf32> to vector<8x128xf32>
    %53 = arith.mulf %51, %52 : vector<8x128xf32>
    %cst_21 = arith.constant dense<0.000000e+00> : vector<8xf32>
    %54 = vector.multi_reduction <add>, %53, %cst_21 [1] : vector<8x128xf32> to vector<8xf32>
    %55 = vector.shape_cast %54 : vector<8xf32> to vector<8x1xf32>
    %56 = tpu.concatenate %13, %19, %25, %31, %37, %43, %49, %55 in 1 : vector<8x1xf32>, vector<8x1xf32>, vector<8x1xf32>, vector<8x1xf32>, vector<8x1xf32>, vector<8x1xf32>, vector<8x1xf32>, vector<8x1xf32> -> vector<8x8xf32>
    %57 = vector.broadcast %9 : vector<8x1xf32> to vector<8x8xf32>
    %58 = arith.addf %56, %57 : vector<8x8xf32>
    %cst_22 = arith.constant 0.000000e+00 : f32
    %59 = vector.broadcast %cst_22 : f32 to vector<8x8xf32>
    %60 = arith.cmpf ogt, %58, %59 : vector<8x8xf32>
    %cst_23 = arith.constant 2.000000e-01 : f32
    %61 = vector.broadcast %cst_23 : f32 to vector<8x8xf32>
    %62 = arith.mulf %61, %58 : vector<8x8xf32>
    %63 = arith.select %60, %58, %62 : vector<8x8xi1>, vector<8x8xf32>
    %c0_24 = arith.constant 0 : index
    %c0_25 = arith.constant 0 : index
    %64 = vector.load %arg2[%c0_24, %c0_25] : memref<8x8xf32, #tpu.memory_space<vmem>>, vector<8x8xf32>
    %cst_26 = arith.constant 0.000000e+00 : f32
    %65 = vector.broadcast %cst_26 : f32 to vector<8x8xf32>
    %66 = arith.cmpf ogt, %64, %65 : vector<8x8xf32>
    %cst_27 = arith.constant 0xFF800000 : f32
    %67 = vector.broadcast %cst_27 : f32 to vector<8x8xf32>
    %68 = arith.select %66, %67, %63 : vector<8x8xi1>, vector<8x8xf32>
    %cst_28 = arith.constant dense<0xFF800000> : vector<8xf32>
    %69 = vector.multi_reduction <maximumf>, %68, %cst_28 [1] : vector<8x8xf32> to vector<8xf32>
    %70 = vector.shape_cast %69 : vector<8xf32> to vector<8x1xf32>
    %71 = vector.broadcast %70 : vector<8x1xf32> to vector<8x8xf32>
    %72 = arith.subf %68, %71 : vector<8x8xf32>
    %73 = math.exp %72 : vector<8x8xf32>
    %cst_29 = arith.constant dense<0.000000e+00> : vector<8xf32>
    %74 = vector.multi_reduction <add>, %73, %cst_29 [1] : vector<8x8xf32> to vector<8xf32>
    %75 = vector.shape_cast %74 : vector<8xf32> to vector<8x1xf32>
    %76 = tpu.reciprocal %75 : vector<8x1xf32> -> vector<8x1xf32>
    %77 = vector.broadcast %76 : vector<8x1xf32> to vector<8x8xf32>
    %78 = arith.mulf %73, %77 : vector<8x8xf32>
    %79 = vector.extract_strided_slice %78 {offsets = [0, 0], sizes = [8, 1], strides = [1, 1]} : vector<8x8xf32> to vector<8x1xf32>
    %80 = vector.broadcast %79 : vector<8x1xf32> to vector<8x128xf32>
    %81 = arith.mulf %80, %5 : vector<8x128xf32>
    %82 = vector.extract_strided_slice %78 {offsets = [0, 1], sizes = [8, 1], strides = [1, 1]} : vector<8x8xf32> to vector<8x1xf32>
    %83 = vector.extract_strided_slice %3 {offsets = [0, 16], sizes = [8, 16], strides = [1, 1]} : vector<8x128xf32> to vector<8x16xf32>
    %cst_30 = arith.constant dense<0.000000e+00> : vector<8x128xf32>
    %84 = tpu.matmul %83, %0, %cst_30 {dimension_numbers = #tpu.dot_dimension_numbers<[1], [0], [0], [1], [0, 0, 1, 1], [], []>} : vector<8x16xf32>, vector<16x128xf32>, vector<8x128xf32> -> vector<8x128xf32>
    %85 = vector.broadcast %82 : vector<8x1xf32> to vector<8x128xf32>
    %86 = arith.mulf %85, %84 : vector<8x128xf32>
    %87 = arith.addf %81, %86 : vector<8x128xf32>
    %88 = vector.extract_strided_slice %78 {offsets = [0, 2], sizes = [8, 1], strides = [1, 1]} : vector<8x8xf32> to vector<8x1xf32>
    %89 = vector.extract_strided_slice %3 {offsets = [0, 32], sizes = [8, 16], strides = [1, 1]} : vector<8x128xf32> to vector<8x16xf32>
    %cst_31 = arith.constant dense<0.000000e+00> : vector<8x128xf32>
    %90 = tpu.matmul %89, %0, %cst_31 {dimension_numbers = #tpu.dot_dimension_numbers<[1], [0], [0], [1], [0, 0, 1, 1], [], []>} : vector<8x16xf32>, vector<16x128xf32>, vector<8x128xf32> -> vector<8x128xf32>
    %91 = vector.broadcast %88 : vector<8x1xf32> to vector<8x128xf32>
    %92 = arith.mulf %91, %90 : vector<8x128xf32>
    %93 = arith.addf %87, %92 : vector<8x128xf32>
    %94 = vector.extract_strided_slice %78 {offsets = [0, 3], sizes = [8, 1], strides = [1, 1]} : vector<8x8xf32> to vector<8x1xf32>
    %95 = vector.extract_strided_slice %3 {offsets = [0, 48], sizes = [8, 16], strides = [1, 1]} : vector<8x128xf32> to vector<8x16xf32>
    %cst_32 = arith.constant dense<0.000000e+00> : vector<8x128xf32>
    %96 = tpu.matmul %95, %0, %cst_32 {dimension_numbers = #tpu.dot_dimension_numbers<[1], [0], [0], [1], [0, 0, 1, 1], [], []>} : vector<8x16xf32>, vector<16x128xf32>, vector<8x128xf32> -> vector<8x128xf32>
    %97 = vector.broadcast %94 : vector<8x1xf32> to vector<8x128xf32>
    %98 = arith.mulf %97, %96 : vector<8x128xf32>
    %99 = arith.addf %93, %98 : vector<8x128xf32>
    %100 = vector.extract_strided_slice %78 {offsets = [0, 4], sizes = [8, 1], strides = [1, 1]} : vector<8x8xf32> to vector<8x1xf32>
    %101 = vector.extract_strided_slice %3 {offsets = [0, 64], sizes = [8, 16], strides = [1, 1]} : vector<8x128xf32> to vector<8x16xf32>
    %cst_33 = arith.constant dense<0.000000e+00> : vector<8x128xf32>
    %102 = tpu.matmul %101, %0, %cst_33 {dimension_numbers = #tpu.dot_dimension_numbers<[1], [0], [0], [1], [0, 0, 1, 1], [], []>} : vector<8x16xf32>, vector<16x128xf32>, vector<8x128xf32> -> vector<8x128xf32>
    %103 = vector.broadcast %100 : vector<8x1xf32> to vector<8x128xf32>
    %104 = arith.mulf %103, %102 : vector<8x128xf32>
    %105 = arith.addf %99, %104 : vector<8x128xf32>
    %106 = vector.extract_strided_slice %78 {offsets = [0, 5], sizes = [8, 1], strides = [1, 1]} : vector<8x8xf32> to vector<8x1xf32>
    %107 = vector.extract_strided_slice %3 {offsets = [0, 80], sizes = [8, 16], strides = [1, 1]} : vector<8x128xf32> to vector<8x16xf32>
    %cst_34 = arith.constant dense<0.000000e+00> : vector<8x128xf32>
    %108 = tpu.matmul %107, %0, %cst_34 {dimension_numbers = #tpu.dot_dimension_numbers<[1], [0], [0], [1], [0, 0, 1, 1], [], []>} : vector<8x16xf32>, vector<16x128xf32>, vector<8x128xf32> -> vector<8x128xf32>
    %109 = vector.broadcast %106 : vector<8x1xf32> to vector<8x128xf32>
    %110 = arith.mulf %109, %108 : vector<8x128xf32>
    %111 = arith.addf %105, %110 : vector<8x128xf32>
    %112 = vector.extract_strided_slice %78 {offsets = [0, 6], sizes = [8, 1], strides = [1, 1]} : vector<8x8xf32> to vector<8x1xf32>
    %113 = vector.extract_strided_slice %3 {offsets = [0, 96], sizes = [8, 16], strides = [1, 1]} : vector<8x128xf32> to vector<8x16xf32>
    %cst_35 = arith.constant dense<0.000000e+00> : vector<8x128xf32>
    %114 = tpu.matmul %113, %0, %cst_35 {dimension_numbers = #tpu.dot_dimension_numbers<[1], [0], [0], [1], [0, 0, 1, 1], [], []>} : vector<8x16xf32>, vector<16x128xf32>, vector<8x128xf32> -> vector<8x128xf32>
    %115 = vector.broadcast %112 : vector<8x1xf32> to vector<8x128xf32>
    %116 = arith.mulf %115, %114 : vector<8x128xf32>
    %117 = arith.addf %111, %116 : vector<8x128xf32>
    %118 = vector.extract_strided_slice %78 {offsets = [0, 7], sizes = [8, 1], strides = [1, 1]} : vector<8x8xf32> to vector<8x1xf32>
    %119 = vector.extract_strided_slice %3 {offsets = [0, 112], sizes = [8, 16], strides = [1, 1]} : vector<8x128xf32> to vector<8x16xf32>
    %cst_36 = arith.constant dense<0.000000e+00> : vector<8x128xf32>
    %120 = tpu.matmul %119, %0, %cst_36 {dimension_numbers = #tpu.dot_dimension_numbers<[1], [0], [0], [1], [0, 0, 1, 1], [], []>} : vector<8x16xf32>, vector<16x128xf32>, vector<8x128xf32> -> vector<8x128xf32>
    %121 = vector.broadcast %118 : vector<8x1xf32> to vector<8x128xf32>
    %122 = arith.mulf %121, %120 : vector<8x128xf32>
    %123 = arith.addf %117, %122 : vector<8x128xf32>
    %124 = arith.addf %5, %123 : vector<8x128xf32>
    %cst_37 = arith.constant 0.000000e+00 : f32
    %125 = vector.broadcast %cst_37 : f32 to vector<8x128xf32>
    %126 = arith.cmpf ogt, %124, %125 : vector<8x128xf32>
    %127 = math.exp %124 : vector<8x128xf32>
    %cst_38 = arith.constant 1.000000e+00 : f32
    %128 = vector.broadcast %cst_38 : f32 to vector<8x128xf32>
    %129 = arith.subf %127, %128 : vector<8x128xf32>
    %130 = arith.select %126, %124, %129 : vector<8x128xi1>, vector<8x128xf32>
    %c0_39 = arith.constant 0 : index
    %c0_40 = arith.constant 0 : index
    %131 = vector.load %arg5[%c0_39, %c0_40] : memref<8x128xf32, #tpu.memory_space<vmem>>, vector<8x128xf32>
    tpu.vector_store %arg5[%c0_39, %c0_40], %130 {strides = array<i32>} : memref<8x128xf32, #tpu.memory_space<vmem>>, vector<8x128xf32>,
    return
  }
  func.func @transform_0(%arg0: i32) -> (i32, i32) {
    %c0_i32 = arith.constant 0 : i32
    %c0_i32_0 = arith.constant 0 : i32
    return %arg0, %c0_i32 : i32, i32
  }
  func.func @transform_1(%arg0: i32) -> (i32, i32) {
    %c0_i32 = arith.constant 0 : i32
    %c0_i32_0 = arith.constant 0 : i32
    return %arg0, %c0_i32 : i32, i32
  }
  func.func @transform_2(%arg0: i32) -> (i32, i32) {
    %c0_i32 = arith.constant 0 : i32
    %c0_i32_0 = arith.constant 0 : i32
    %c0_i32_1 = arith.constant 0 : i32
    return %c0_i32, %c0_i32_0 : i32, i32
  }
  func.func @transform_3(%arg0: i32) -> (i32, i32) {
    %c0_i32 = arith.constant 0 : i32
    %c0_i32_0 = arith.constant 0 : i32
    %c0_i32_1 = arith.constant 0 : i32
    return %c0_i32, %c0_i32_0 : i32, i32
  }
  func.func @transform_4(%arg0: i32) -> (i32, i32) {
    %c0_i32 = arith.constant 0 : i32
    %c0_i32_0 = arith.constant 0 : i32
    return %arg0, %c0_i32 : i32, i32
  }
}

</mosaic_0001>

<bundles_post_ra>
// kernel: tpu_custom_call.1
= control target key start
LH: loop header
LB: loop body
LE: loop exit
PB: predicated region body
PF: predicated region fallthrough
CT: control target
= control target key end

     0   :  { %9 = vsyncpa [#allocation3], 0  ;;  %s661_s0 = inlined_call_operand.hbm [shape: f32[8,128], index: 0, kind: input, shape index: {}]   ;;  %s662_s1 = inlined_call_operand.hbm [shape: f32[8,8], index: 1, kind: input, shape index: {}]   ;;  %s663_s2 = inlined_call_operand.hbm [shape: f32[16,128], index: 2, kind: input, shape index: {}]   ;;  %s664_s3 = inlined_call_operand.vmem [shape: f32[2,128], index: 3, kind: input, shape index: {}]   ;;  %s665_s4 = inlined_call_operand.hbm [shape: f32[8,128], index: 4, kind: output, shape index: {}]  }
   0x1   :  { %10 = vsyncpa [#allocation6], 0  ;;  %s28_s17 = sshll.u32 %s662_s1, 4  ;;  %s29_s17 = int_to_ptr.hbm [resolvable:$true] %s28_s17 }
   0x2   :  { %11 = vsyncpa [#allocation4], 0  ;;  %s555_s18 = smov [#allocation5]   ;;  %s17_s22 = sshll.u32 %s661_s0, 4  ;;  %s18_s22 = int_to_ptr.hbm [resolvable:$true] %s17_s22 }
   0x3   :  { %s30_s19 = sshll.u32 %s555_s18, 4  ;;  %s556_s23 = smov [#allocation2]   ;;  %s31_s19 = int_to_ptr.vmem [resolvable:$true] %s30_s19 }
   0x4   :  { %33 = dma.hbm_to_vmem [thread:$0]  %s29_s17, 128, %s31_s19, [#allocation6]  }
   0x5   :  { %s19_s24 = sshll.u32 %s556_s23, 4  ;;  %s38_s27 = sshll.u32 %s663_s2, 4  ;;  %s20_s24 = int_to_ptr.vmem [resolvable:$true] %s19_s24  ;;  %s39_s27 = int_to_ptr.hbm [resolvable:$true] %s38_s27 }
   0x6   :  { %22 = dma.hbm_to_vmem [thread:$0]  %s18_s22, 128, %s20_s24, [#allocation3]  }
   0x7   :  { %s557_s1 = smov [#allocation7]   ;;  %s558_s29 = smov 128  }
   0x8   :  { %s40_s28 = sshll.u32 %s557_s1, 4  ;;  %s559_s30 = smov 8   ;;  %s41_s28 = int_to_ptr.vmem [resolvable:$true] %s40_s28 }
   0x9   :  { %46 = dma.hbm_to_vmem [thread:$0]  %s39_s27, 256, %s41_s28, [#allocation6], %s558_s29, %s558_s29, %s559_s30  }
   0xa   :  { %549 = dma.done.wait [#allocation3], 128  }
   0xb   :  { %550 = vsyncadd [#allocation3], 4294967168 }
   0xc   :  { %551 = dma.done.wait [#allocation6], 384  }
   0xd   :  { %552 = vsyncadd [#allocation6], 4294966912  ;;  %v65_v0 = vld [vmem:[#allocation2] sm:$0xff]  ;;  %v62_v1 = vld [vmem:[#allocation7 + $0x8] sm:$0xff]  ;;  %s560_s0 = smov 96   ;;  %s561_s5 = smov 112  }
   0xe   :  { %125 = vrot.lane.b32.xlu0 %v65_v0, %s560_s0  ;;  %98 = vrot.lane.b32.xlu1 %v65_v0, %s561_s5  ;;  %s562_s2 = smov 16   ;;  %s563_s6 = smov 80   ;;  %v61_v2 = vld [vmem:[#allocation7] sm:$0xff]  ;;  %vm66_vm0 = vcmask 130048   ;;  %v445_v11 = vld [vmem:[%s664_s3 + $0x1] ss:$0 sm:$0xff] }
   0xf   :  { %260 = vrot.lane.b32.xlu2 %v65_v0, %s562_s2  ;;  %143 = vmatpush.msra.mxu2 %v62_v1  ;;  %s564_s7 = smov 32   ;;  %s565_s8 = smov 64   ;;  %v446_v27 = vld [vmem:[%s664_s3] ss:$0 sm:$0xff]  ;;  %vm287_vm1 = vcmask 7168   ;;  %vm289_vm2 = vcmask 15360  }
  0x10   :  { %84 = vmatpush.msra.mxu0 %v62_v1  ;;  %116 = vmatpush.msra.mxu1 %v62_v1  ;;  %s566_s9 = smov 48   ;;  %vm291_vm3 = vcmask 23552   ;;  %vm293_vm4 = vcmask 31744   ;;  %vm295_vm5 = vcmask 39936   ;;  %vm297_vm6 = vcmask 48128   ;;  %v305_v45 = vld [vmem:[#allocation5] sm:$0xff] }
  0x11   :  { %170 = vmatpush.msra.mxu3 %v62_v1  ;;  %144 = vmatpush.msra.mxu2 %v61_v2  ;;  %vm299_vm7 = vcmask 56320   ;;  %vm306_vm9 = vcmp.gt.f32.partialorder %v305_v45, 0.0  ;;  %vm308_vm10 = vcmask 64512   ;;  %v567_v56 = vmov 2   ;;  %s575_s3 = smov [#allocation8]   ;;  %s395_s17 = sshll.u32 %s665_s4, 4  ;;  %s396_s17 = int_to_ptr.hbm [resolvable:$true] %s395_s17 }
  0x12   :  { %85 = vmatpush.msra.mxu0 %v61_v2  ;;  %117 = vmatpush.msra.mxu1 %v61_v2  ;;  %v568_v57 = vmov 1   ;;  %v569_v58 = vmov 0   ;;  %s393_s14 = sshll.u32 %s575_s3, 4  ;;  %s394_s14 = int_to_ptr.vmem [resolvable:$true] %s393_s14 }
  0x13   :  { %406 = vmatmul.msk.f32.vlgmr.msra.gmra.mxu0 %vm66_vm0, %v65_v0  ;;  %171 = vmatpush.msra.mxu3 %v61_v2 }
  0x14   :  { %197 = vmatpush.msrb.mxu0 %v62_v1  ;;  %224 = vmatpush.msrb.mxu1 %v62_v1 }
  0x15   :  { %278 = vmatpush.msrb.mxu3 %v62_v1  ;;  %251 = vmatpush.msrb.mxu2 %v62_v1 }
  0x16   :  { %152 = vrot.lane.b32.xlu0 %v65_v0, %s563_s6  ;;  %233 = vrot.lane.b32.xlu1 %v65_v0, %s564_s7 }
  0x17   :  { %179 = vrot.lane.b32.xlu2 %v65_v0, %s565_s8  ;;  %198 = vmatpush.msrb.mxu0 %v61_v2 }
  0x18   :  { %279 = vmatpush.msrb.mxu3 %v61_v2  ;;  %225 = vmatpush.msrb.mxu1 %v61_v2 }
  0x19   :  { %252 = vmatpush.msrb.mxu2 %v61_v2  ;;  %438 = vset.pattern.permute.xlu1 %v567_v56 }
  0x1a   :  { %437 = vset.pattern.permute.xlu0 %v568_v57  ;;  %436 = vset.pattern.permute.xlu2 %v569_v58 }
  0x1e   :  { %206 = vrot.lane.b32.xlu0 %v65_v0, %s566_s9 }
  0x69   :  { %v261_v3 = vpop.permute.xlu2 %260 }
  0x71   :  { %v180_v4 = vpop.permute.xlu2 %179 }
  0x72   :  { %410 = vmatmul.msk.f32.vlgmr.msrb.gmra.mxu0 %vm66_vm0, %v180_v4 }
  0x80   :  { %v126_v5 = vpop.permute.xlu0 %125  ;;  %v99_v6 = vpop.permute.xlu1 %98 }
  0x81   :  { %408 = vmatmul.msk.f32.vlgmr.msra.gmra.mxu2 %vm66_vm0, %v126_v5  ;;  %407 = vmatmul.msk.f32.vlgmr.msra.gmra.mxu1 %vm66_vm0, %v99_v6 }
  0x88   :  { %v153_v7 = vpop.permute.xlu0 %152  ;;  %v234_v8 = vpop.permute.xlu1 %233 }
  0x89   :  { %409 = vmatmul.msk.f32.vlgmr.msra.gmra.mxu3 %vm66_vm0, %v153_v7  ;;  %412 = vmatmul.msk.f32.vlgmr.msrb.gmra.mxu2 %vm66_vm0, %v234_v8  ;;  %v570_v7 = vmov 4   ;;  %v571_v8 = vmov 7  }
  0x90   :  { %v207_v9 = vpop.permute.xlu0 %206  ;;  %v618_v10 = vpop.f32.mrf.mxu0 }
  0x91   :  { %413 = vmatmul.msk.f32.vlgmr.msrb.gmra.mxu3 %vm66_vm0, %v261_v3  ;;  %411 = vmatmul.msk.f32.vlgmr.msrb.gmra.mxu1 %vm66_vm0, %v207_v9  ;;  %v95_v12 = vmul.f32 %v445_v11, %v618_v10  ;;  %v91_v28 = vmul.f32 %v446_v27, %v618_v10  ;;  %v572_v9 = vmov 3  }
  0x93   :  { %96 = vadd.xlane.f32.xlu1 %v95_v12  ;;  %v574_v12 = vmov 5  }
  0xef   :  { %v624_v13 = vpop.f32.mrf.mxu0 }
  0xf0   :  { %v203_v14 = vmul.f32 %v445_v11, %v624_v13 }
  0xf2   :  { %204 = vadd.xlane.f32.xlu1 %v203_v14 }
  0xfe   :  { %v627_v15 = vpop.f32.mrf.mxu1 }
  0xff   :  { %v122_v16 = vmul.f32 %v445_v11, %v627_v15 }
 0x101   :  { %123 = vadd.xlane.f32.xlu2 %v122_v16 }
 0x104   :  { %v630_v17 = vpop.f32.mrf.mxu2 }
 0x105   :  { %v149_v18 = vmul.f32 %v445_v11, %v630_v17 }
 0x106   :  { %v97_v30 = vpop.xlane.xlu1 %96 }
 0x107   :  { %150 = vadd.xlane.f32.xlu0 %v149_v18 }
 0x10c   :  { %v633_v19 = vpop.f32.mrf.mxu3  ;;  %v635_v20 = vpop.f32.mrf.mxu2 }
 0x10d   :  { %v176_v21 = vmul.f32 %v445_v11, %v633_v19  ;;  %v257_v22 = vmul.f32 %v445_v11, %v635_v20 }
 0x10e   :  { %v639_v23 = vpop.f32.mrf.mxu1 }
 0x10f   :  { %177 = vadd.xlane.f32.xlu2 %v176_v21  ;;  %258 = vadd.xlane.f32.xlu0 %v257_v22  ;;  %v230_v24 = vmul.f32 %v445_v11, %v639_v23 }
 0x114   :  { %v642_v25 = vpop.f32.mrf.mxu3 }
 0x115   :  { %v284_v26 = vmul.f32 %v445_v11, %v642_v25  ;;  %v573_v11 = vmov 6  }
 0x117   :  { %231 = vadd.xlane.f32.xlu2 %v230_v24  ;;  %285 = vadd.xlane.f32.xlu1 %v284_v26 }
 0x11f   :  { %92 = vadd.xlane.f32.xlu2 %v91_v28 }
 0x165   :  { %v205_v35 = vpop.xlane.xlu1 %204 }
 0x174   :  { %v124_v29 = vpop.xlane.xlu2 %123 }
 0x175   :  { %v288_v32 = vsel %vm287_vm1, %v97_v30, %v124_v29 }
 0x17a   :  { %v151_v33 = vpop.xlane.xlu0 %150 }
 0x17b   :  { %v290_v34 = vsel %vm289_vm2, %v288_v32, %v151_v33 }
 0x182   :  { %v178_v31 = vpop.xlane.xlu2 %177  ;;  %v259_v40 = vpop.xlane.xlu0 %258 }
 0x183   :  { %v292_v36 = vsel %vm291_vm3, %v290_v34, %v178_v31 }
 0x184   :  { %v294_v38 = vsel %vm293_vm4, %v292_v36, %v205_v35 }
 0x18a   :  { %v232_v37 = vpop.xlane.xlu2 %231  ;;  %v286_v42 = vpop.xlane.xlu1 %285 }
 0x18b   :  { %v296_v39 = vsel %vm295_vm5, %v294_v38, %v232_v37 }
 0x18c   :  { %v298_v41 = vsel %vm297_vm6, %v296_v39, %v259_v40 }
 0x18d   :  { %v300_v43 = vsel %vm299_vm7, %v298_v41, %v286_v42 }
 0x192   :  { %v93_v44 = vpop.xlane.xlu2 %92 }
 0x193   :  { %v301_v46 = vadd.f32 %v300_v43, %v93_v44 }
 0x195   :  { %v303_v47 = vmul.f32 0.2, %v301_v46  ;;  %vm302_vm8 = vcmp.gt.f32.partialorder %v301_v46, 0.0 }
 0x197   :  { %v304_v48 = vsel %vm302_vm8, %v301_v46, %v303_v47 }
 0x198   :  { %v307_v49 = vsel %vm306_vm9, -inf, %v304_v48 }
 0x199   :  { %v309_v50 = vsel %vm308_vm10, %v307_v49, -inf }
 0x19a   :  { %310 = vmax.xlane.f32.xlu0 %v309_v50 }
 0x20d   :  { %v311_v51 = vpop.xlane.xlu0 %310 }
 0x20e   :  { %v312_v52 = vsub.f32 %v307_v49, %v311_v51 }
 0x210   :  { %v313_v53 = vmul.f32 1.442695, %v312_v52 }
 0x212   :  { %447 = vpow2.f32 %v313_v53 }
 0x218   :  { %v448_v54 = vpop.eup %447 }
 0x219   :  { %v315_v55 = vsel %vm308_vm10, %v448_v54, 0.0 }
 0x21a   :  { %316 = vadd.xlane.f32.xlu1 %v315_v55 }
 0x28d   :  { %v317_v59 = vpop.xlane.xlu1 %316 }
 0x28e   :  { %449 = vrcp.f32 %v317_v59  ;;  %v329_v63 = vand.u32 2147483648, %v317_v59  ;;  %v327_v1 = vand.u32 2147483647, %v317_v59  ;;  %vm323_vm12 = vweird.f32 %v317_v59 }
 0x290   :  { %v330_v3 = vor.u32 1.1754944e-38, %v329_v63  ;;  %vm328_vm14 = vcmp.eq.f32.partialorder %v327_v1, 8.507059e+37 }
 0x294   :  { %v450_v60 = vpop.eup %449 }
 0x295   :  { %v319_v61 = vmul.f32 %v450_v60, %v317_v59  ;;  %vm324_vm11 = vweird.f32 %v450_v60 }
 0x296   :  { %vm325_vm13 = vmor %vm323_vm12, %vm324_vm11 }
 0x297   :  { %v320_v62 = vsub.f32 1.0, %v319_v61 }
 0x299   :  { %v321_v0 = vmul.f32 %v450_v60, %v320_v62 }
 0x29b   :  { %v322_v2 = vadd.f32 %v450_v60, %v321_v0 }
 0x29d   :  { %v326_v4 = vsel %vm325_vm13, %v450_v60, %v322_v2 }
 0x29e   :  { %v331_v5 = vsel %vm328_vm14, %v330_v3, %v326_v4 }
 0x29f   :  { %v332_v6 = vmul.f32 %v448_v54, %v331_v5 }
 0x2a1   :  { %346 = vperm.xlu1 %438, %v332_v6   ;;  %340 = vperm.xlu0 %437, %v332_v6  }
 0x2a2   :  { %335 = vperm.xlu2 %436, %v332_v6  }
 0x2a9   :  { %440 = vset.pattern.permute.xlu1 %v570_v7  ;;  %444 = vset.pattern.permute.xlu0 %v571_v8 }
 0x2aa   :  { %439 = vset.pattern.permute.xlu2 %v572_v9  ;;  %358 = vperm.xlu1 %440, %v332_v6  }
 0x2ab   :  { %352 = vperm.xlu2 %439, %v332_v6  }
 0x2b2   :  { %442 = vset.pattern.permute.xlu1 %v573_v11 }
 0x2b3   :  { %441 = vset.pattern.permute.xlu2 %v574_v12  ;;  %370 = vperm.xlu1 %442, %v332_v6  }
 0x2b4   :  { %364 = vperm.xlu2 %441, %v332_v6  }
 0x2bc   :  { %443 = vset.pattern.permute.xlu2 %v571_v8 }
 0x2bd   :  { %376 = vperm.xlu2 %443, %v332_v6  }
 0x2fc   :  { %v336_v14 = vpop.permute.xlu2 %335 }
 0x2fd   :  { %v338_v24 = vmul.f32 %v336_v14, %v618_v10 }
 0x305   :  { %v353_v16 = vpop.permute.xlu2 %352 }
 0x306   :  { %v355_v31 = vmul.f32 %v353_v16, %v633_v19 }
 0x30e   :  { %v365_v28 = vpop.permute.xlu2 %364 }
 0x30f   :  { %v367_v35 = vmul.f32 %v365_v28, %v639_v23 }
 0x313   :  { %v347_v18 = vpop.permute.xlu1 %346  ;;  %v341_v21 = vpop.permute.xlu0 %340 }
 0x314   :  { %v343_v22 = vmul.f32 %v341_v21, %v627_v15  ;;  %v349_v27 = vmul.f32 %v347_v18, %v630_v17 }
 0x316   :  { %v344_v26 = vadd.f32 %v343_v22, %v338_v24 }
 0x317   :  { %v377_v36 = vpop.permute.xlu2 %376 }
 0x318   :  { %v350_v29 = vadd.f32 %v349_v27, %v344_v26  ;;  %v379_v39 = vmul.f32 %v377_v36, %v642_v25 }
 0x31a   :  { %v356_v33 = vadd.f32 %v355_v31, %v350_v29 }
 0x31c   :  { %v359_v30 = vpop.permute.xlu1 %358 }
 0x31d   :  { %v361_v32 = vmul.f32 %v359_v30, %v624_v13 }
 0x31f   :  { %v362_v34 = vadd.f32 %v361_v32, %v356_v33 }
 0x321   :  { %v368_v38 = vadd.f32 %v367_v35, %v362_v34 }
 0x325   :  { %v371_v37 = vpop.permute.xlu1 %370 }
 0x326   :  { %v373_v15 = vmul.f32 %v371_v37, %v635_v20 }
 0x328   :  { %v374_v40 = vadd.f32 %v373_v15, %v368_v38 }
 0x32a   :  { %v380_v17 = vadd.f32 %v379_v39, %v374_v40 }
 0x32c   :  { %v381_v41 = vadd.f32 %v380_v17, %v618_v10 }
 0x32e   :  { %v383_v42 = vmul.f32 1.442695, %v381_v41  ;;  %vm382_vm15 = vcmp.gt.f32.partialorder %v381_v41, 0.0 }
 0x330   :  { %451 = vpow2.f32 %v383_v42 }
 0x336   :  { %v452_v13 = vpop.eup %451 }
 0x337   :  { %v414_v19 = vadd.f32 -1.0, %v452_v13 }
 0x339   :  { %v386_v20 = vsel %vm382_vm15, %v381_v41, %v414_v19 }
 0x33a   :  { %387 = vst [vmem:[#allocation8] sm:$0xff] %v386_v20 }
 0x33b   :  { %398 = dma.vmem_to_hbm [thread:$0]  %s394_s14, 128, %s396_s17, [#allocation4]  }
 0x33c   :  { %553 = dma.done.wait [#allocation4], 128  }
 0x33d   :  { %554 = vsyncadd [#allocation4], 4294967168 }
 0x33e   :  { %403 = vsyncpa [#allocation3], 1 }
 0x33f   :  { %404 = vsyncpa [#allocation6], 1 }
 0x340   :  { %405 = vsyncpa [#allocation4], 1 }

</bundles_post_ra>
